<compile_context>
chip_gen: v5e
topology: v5e:2x2
jax: 0.10.0
libtpu: 0.0.40
codegen_flags: <defaults>
</compile_context>

<pallas_src>
import functools

import jax
import jax.numpy as jnp
from jax.experimental import pallas as pl
from jax.experimental.pallas import tpu as pltpu


def _round_up(x: int, m: int) -> int:
    return (x + m - 1) // m * m


def _cdiv(a: int, b: int) -> int:
    return -(-a // b)


def weight_net_kernel(x_ref, w_ref, b_ref, o_ref, acc_ref):
    # x_ref: (tm, tk)   w_ref: (tn, tk)  [torch out x in layout]
    # b_ref: (1, tn) f32   o_ref: (tm, tn)
    # acc_ref: (tm, tn) f32 scratch, resident across the K grid axis.
    k = pl.program_id(2)

    @pl.when(k == 0)
    def _init():
        # Seed the accumulator with the bias: saves a full (tm, tn) VPU add
        # in the epilogue.
        acc_ref[...] = jnp.broadcast_to(b_ref[...], acc_ref.shape)

    # Contract the LAST dim of both operands: x[m,k] * w[n,k] -> [m,n].
    # Mosaic drives this as a B-transposed MXU matmul; no XLU transpose and
    # no extra W materialization in the wrapper.
    acc_ref[...] += jax.lax.dot_general(
        x_ref[...],
        w_ref[...],
        dimension_numbers=(((1,), (1,)), ((), ())),
        preferred_element_type=jnp.float32,
    )

    @pl.when(k == pl.num_programs(2) - 1)
    def _finalize():
        o_ref[...] = jax.nn.sigmoid(acc_ref[...]).astype(o_ref.dtype)


def _vmem_limit_bytes() -> int:
    """Generation-aware VMEM ceiling (3/4 of physical, <=96 MiB).

    Falls back to a v7x-safe 48 MiB if the hardware query is unavailable.
    """
    try:
        cap = pltpu.get_tpu_info().vmem_capacity_bytes
        return min((cap * 3) // 4, 96 * 1024 * 1024)
    except Exception:  # pragma: no cover - conservative fallback
        return 48 * 1024 * 1024


def _pad_cast_2d(a, rows, cols, dtype):
    """Cast + zero-pad in one fused pass; no-op when already aligned."""
    if a.dtype != dtype:
        a = a.astype(dtype)
    r, c = a.shape
    if (r, c) != (rows, cols):
        a = jnp.pad(a, ((0, rows - r), (0, cols - c)))
    return a


@functools.partial(
    jax.jit,
    static_argnames=("out_dtype", "compute_dtype", "tm_cap", "tn_cap", "tk_cap"),
)
def weight_net_forward(
    x,
    weight,
    bias,
    *,
    out_dtype=None,
    compute_dtype=jnp.bfloat16,
    tm_cap=512,
    tn_cap=512,
    tk_cap=None,
):
    """sigmoid(x @ weight.T + bias) as a tiled Pallas TPU kernel."""
    B, Hin = x.shape
    Hout, Hin_w = weight.shape
    assert Hin == Hin_w, "weight inner dim must match x feature dim"
    assert bias.shape == (Hout,)

    cdt = jnp.dtype(compute_dtype)
    odt = jnp.dtype(out_dtype) if out_dtype is not None else jnp.dtype(x.dtype)
    in_b, out_b = cdt.itemsize, odt.itemsize
    # Sub-32-bit dtypes pack along sublanes: bf16 tiles want (16, 128).
    sub_m = 16 if in_b < 4 else 8
    if tk_cap is None:
        tk_cap = 2048 if in_b <= 2 else 1024

    # ---- tile selection --------------------------------------------------
    # Small batch => one M tile covering the whole (padded) batch, so the
    # large W operand streams from HBM exactly once.
    tm = min(tm_cap, _round_up(B, sub_m))
    tn = min(tn_cap, _round_up(Hout, 128))
    tk = min(tk_cap, _round_up(Hin, 128))

    # v7x has 2 TensorCores: keep >= 2 parallel (M, N) tiles when Hout allows
    # so dimension_semantics=("parallel", "parallel", ...) can shard them.
    if _cdiv(B, tm) * _cdiv(Hout, tn) == 1 and tn >= 256:
        tn = _round_up(tn // 2, 128)

    # Keep the double-buffered working set inside the VMEM budget.
    vmem_limit = _vmem_limit_bytes()
    budget = vmem_limit // 2

    def _working_set(tm_, tn_, tk_):
        return (
            2 * (tm_ * tk_ * in_b + tn_ * tk_ * in_b + tn_ * 4 + tm_ * tn_ * out_b)
            + tm_ * tn_ * 4
        )

    while _working_set(tm, tn, tk) > budget and tk > 512:
        tk = max(512, (tk // 2) // 128 * 128)
    while _working_set(tm, tn, tk) > budget and tn > 256:
        tn = max(256, (tn // 2) // 128 * 128)
    while _working_set(tm, tn, tk) > budget and tm > 2 * sub_m:
        tm = max(sub_m, (tm // 2) // sub_m * sub_m)

    Bp = _round_up(B, tm)
    Np = _round_up(Hout, tn)
    Kp = _round_up(Hin, tk)
    grid = (Bp // tm, Np // tn, Kp // tk)

    # ---- pad + cast (fused; skipped entirely when already aligned) --------
    xp = _pad_cast_2d(x, Bp, Kp, cdt)
    wp = _pad_cast_2d(weight, Np, Kp, cdt)
    bias_f32 = bias.astype(jnp.float32)
    if Np != Hout:
        bias_f32 = jnp.pad(bias_f32, (0, Np - Hout))
    bp = bias_f32.reshape(1, Np)

    out_padded = pl.pallas_call(
        weight_net_kernel,
        out_shape=jax.ShapeDtypeStruct((Bp, Np), odt),
        grid_spec=pltpu.PrefetchScalarGridSpec(
            num_scalar_prefetch=0,
            grid=grid,
            in_specs=[
                pl.BlockSpec((tm, tk), lambda i, j, k: (i, k)),  # x tile
                pl.BlockSpec((tn, tk), lambda i, j, k: (j, k)),  # W tile (out x in)
                pl.BlockSpec((1, tn), lambda i, j, k: (0, j)),   # bias tile
            ],
            out_specs=pl.BlockSpec((tm, tn), lambda i, j, k: (i, j)),
            scratch_shapes=[pltpu.VMEM((tm, tn), jnp.float32)],
        ),
        compiler_params=pltpu.CompilerParams(
            # M / N tiles are independent (megacore-shardable on v7x);
            # K is the reduction axis and stays sequential.
            dimension_semantics=("parallel", "parallel", "arbitrary"),
            vmem_limit_bytes=vmem_limit,
        ),
    )(xp, wp, bp)

    if (Bp, Np) == (B, Hout):
        return out_padded
    return out_padded[:B, :Hout]


if __name__ == "__main__":
    hid = 32
    batch = 8

    key = jax.random.PRNGKey(0)
    kx, kw, kb = jax.random.split(key, 3)

    # Deterministic parameter init (mimicking nn.Linear's uniform range).
    bound = 1.0 / jnp.sqrt(hid)
    weight = jax.random.uniform(kw, (hid, hid), jnp.float32, -bound, bound)
    bias = jax.random.uniform(kb, (hid,), jnp.float32, -bound, bound)

    x = jax.random.normal(kx, (batch, hid), jnp.float32)

    out = weight_net_forward(x, weight, bias)
    out = jax.block_until_ready(out)

    # Reference checks (plain JAX).
    ref_f32 = jax.nn.sigmoid(x @ weight.T + bias)
    ref_bf16 = jax.nn.sigmoid(
        x.astype(jnp.bfloat16).astype(jnp.float32)
        @ weight.astype(jnp.bfloat16).astype(jnp.float32).T
        + bias
    )
    assert out.shape == ref_f32.shape, "shape mismatch vs reference"
    # Tight check vs bf16-input / f32-accumulate emulation of the kernel math.
    assert jnp.allclose(out, ref_bf16, atol=1e-3, rtol=1e-3), (
        "mismatch vs bf16-emulated reference"
    )
    # Loose sanity check vs the exact f32 reference (bf16 rounding of inputs).
    assert jnp.allclose(out, ref_f32, atol=2e-2, rtol=2e-2), (
        "mismatch vs f32 reference"
    )

    print("KERNEL_OK")
</pallas_src>

<mosaic_0001>
module attributes {stable_mosaic.version = 11 : i64} {
  func.func @weight_net_kernel(%arg0: i32, %arg1: i32, %arg2: i32, %arg3: memref<16x128xbf16, #tpu.memory_space<vmem>>, %arg4: memref<128x128xbf16, #tpu.memory_space<vmem>>, %arg5: memref<1x128xf32, #tpu.memory_space<vmem>>, %arg6: memref<16x128xf32, #tpu.memory_space<vmem>>, %arg7: memref<16x128xf32, #tpu.memory_space<vmem>>) attributes {dimension_semantics = [#tpu.dimension_semantics<parallel>, #tpu.dimension_semantics<parallel>, #tpu.dimension_semantics<arbitrary>], iteration_bounds = array<i64: 1, 1, 1>, scalar_prefetch = 0 : i64, scratch_operands = 1 : i64, tpu.core_type = #tpu.core_type<tc>, window_params = [{transform_indices = @transform_0, window_bounds = array<i64: 16, 128>}, {transform_indices = @transform_1, window_bounds = array<i64: 128, 128>}, {transform_indices = @transform_2, window_bounds = array<i64: 1, 128>}, {transform_indices = @transform_3, window_bounds = array<i64: 16, 128>}]} {
    %c0_i32 = arith.constant 0 : i32
    %0 = arith.cmpi eq, %arg2, %c0_i32 : i32
    %1 = arith.extui %0 : i1 to i32
    %c0_i32_0 = arith.constant 0 : i32
    %2 = arith.cmpi ne, %1, %c0_i32_0 : i32
    scf.if %2 {
      %c0_10 = arith.constant 0 : index
      %c0_11 = arith.constant 0 : index
      %12 = vector.load %arg5[%c0_10, %c0_11] : memref<1x128xf32, #tpu.memory_space<vmem>>, vector<1x128xf32>
      %13 = vector.shape_cast %12 : vector<1x128xf32> to vector<1x128xf32>
      %14 = vector.broadcast %13 : vector<1x128xf32> to vector<16x128xf32>
      %c0_12 = arith.constant 0 : index
      %c0_13 = arith.constant 0 : index
      %15 = vector.load %arg7[%c0_12, %c0_13] : memref<16x128xf32, #tpu.memory_space<vmem>>, vector<16x128xf32>
      tpu.vector_store %arg7[%c0_12, %c0_13], %14 {strides = array<i32>} : memref<16x128xf32, #tpu.memory_space<vmem>>, vector<16x128xf32>,
    } else {
    }
    %c0 = arith.constant 0 : index
    %c0_1 = arith.constant 0 : index
    %3 = vector.load %arg7[%c0, %c0_1] : memref<16x128xf32, #tpu.memory_space<vmem>>, vector<16x128xf32>
    %c0_2 = arith.constant 0 : index
    %c0_3 = arith.constant 0 : index
    %4 = vector.load %arg3[%c0_2, %c0_3] : memref<16x128xbf16, #tpu.memory_space<vmem>>, vector<16x128xbf16>
    %c0_4 = arith.constant 0 : index
    %c0_5 = arith.constant 0 : index
    %5 = vector.load %arg4[%c0_4, %c0_5] : memref<128x128xbf16, #tpu.memory_space<vmem>>, vector<128x128xbf16>
    %cst = arith.constant dense<0.000000e+00> : vector<16x128xf32>
    %6 = tpu.matmul %4, %5, %cst {dimension_numbers = #tpu.dot_dimension_numbers<[1], [1], [0], [0], [0, 0, 1, 0], [], []>} : vector<16x128xbf16>, vector<128x128xbf16>, vector<16x128xf32> -> vector<16x128xf32>
    %7 = arith.addf %3, %6 : vector<16x128xf32>
    %c0_6 = arith.constant 0 : index
    %c0_7 = arith.constant 0 : index
    %8 = vector.load %arg7[%c0_6, %c0_7] : memref<16x128xf32, #tpu.memory_space<vmem>>, vector<16x128xf32>
    tpu.vector_store %arg7[%c0_6, %c0_7], %7 {strides = array<i32>} : memref<16x128xf32, #tpu.memory_space<vmem>>, vector<16x128xf32>,
    %c0_i32_8 = arith.constant 0 : i32
    %9 = arith.cmpi eq, %arg2, %c0_i32_8 : i32
    %10 = arith.extui %9 : i1 to i32
    %c0_i32_9 = arith.constant 0 : i32
    %11 = arith.cmpi ne, %10, %c0_i32_9 : i32
    scf.if %11 {
      %c0_10 = arith.constant 0 : index
      %c0_11 = arith.constant 0 : index
      %12 = vector.load %arg7[%c0_10, %c0_11] : memref<16x128xf32, #tpu.memory_space<vmem>>, vector<16x128xf32>
      %13 = arith.negf %12 : vector<16x128xf32>
      %14 = math.exp %13 : vector<16x128xf32>
      %cst_12 = arith.constant 1.000000e+00 : f32
      %15 = vector.broadcast %cst_12 : f32 to vector<16x128xf32>
      %16 = arith.addf %15, %14 : vector<16x128xf32>
      %17 = arith.divf %15, %16 : vector<16x128xf32>
      %c0_13 = arith.constant 0 : index
      %c0_14 = arith.constant 0 : index
      %18 = vector.load %arg6[%c0_13, %c0_14] : memref<16x128xf32, #tpu.memory_space<vmem>>, vector<16x128xf32>
      tpu.vector_store %arg6[%c0_13, %c0_14], %17 {strides = array<i32>} : memref<16x128xf32, #tpu.memory_space<vmem>>, vector<16x128xf32>,
    } else {
    }
    return
  }
  func.func @transform_0(%arg0: i32, %arg1: i32, %arg2: i32) -> (i32, i32) {
    %c0_i32 = arith.constant 0 : i32
    return %arg0, %arg2 : i32, i32
  }
  func.func @transform_1(%arg0: i32, %arg1: i32, %arg2: i32) -> (i32, i32) {
    %c0_i32 = arith.constant 0 : i32
    return %arg1, %arg2 : i32, i32
  }
  func.func @transform_2(%arg0: i32, %arg1: i32, %arg2: i32) -> (i32, i32) {
    %c0_i32 = arith.constant 0 : i32
    %c0_i32_0 = arith.constant 0 : i32
    return %c0_i32, %arg1 : i32, i32
  }
  func.func @transform_3(%arg0: i32, %arg1: i32, %arg2: i32) -> (i32, i32) {
    %c0_i32 = arith.constant 0 : i32
    return %arg0, %arg1 : i32, i32
  }
}

</mosaic_0001>

<bundles_post_ra>
// kernel: weight_net_forward.1
= control target key start
LH: loop header
LB: loop body
LE: loop exit
PB: predicated region body
PF: predicated region fallthrough
CT: control target
= control target key end

     0   :  { %s277_s1 = inlined_call_operand.vmem [shape: bf16[128,128], index: 1, kind: input, shape index: {}]   ;;  %s278_s2 = inlined_call_operand.vmem [shape: f32[1,128], index: 2, kind: input, shape index: {}]   ;;  %s279_s0 = inlined_call_operand.vmem [shape: bf16[16,128], index: 0, kind: input, shape index: {}]   ;;  %s280_s3 = inlined_call_operand.vmem [shape: f32[16,128], index: 3, kind: output, shape index: {}]  }
   0x1   :  { %v211_v0 = vld [vmem:[%s277_s1 + $0x38] sm:$0xff]  ;;  %v210_v1 = vld [vmem:[%s277_s1 + $0x30] sm:$0xff]  ;;  %v209_v2 = vld [vmem:[%s277_s1 + $0x28] sm:$0xff] }
   0x2   :  { %98 = vmatpush.bf16.xpose.msra.mxu0 %v211_v0  ;;  %v208_v3 = vld [vmem:[%s277_s1 + $0x20] sm:$0xff]  ;;  %v207_v4 = vld [vmem:[%s277_s1 + $0x18] sm:$0xff]  ;;  %v206_v5 = vld [vmem:[%s277_s1 + $0x10] sm:$0xff] }
   0x3   :  { %v205_v6 = vld [vmem:[%s277_s1 + $0x8] sm:$0xff]  ;;  %v204_v7 = vld [vmem:[%s277_s1] sm:$0xff] }
   0x4   :  { %v203_v8 = vld [vmem:[%s279_s0] sm:$0xff] }
   0x5   :  { %v212_v9 = vld [vmem:[%s278_s2] ss:$0 sm:$0xff] }
   0xa   :  { %99 = vmatpush.bf16.xpose.msra.mxu0 %v210_v1 }
  0x12   :  { %100 = vmatpush.bf16.xpose.msra.mxu0 %v209_v2 }
  0x1a   :  { %101 = vmatpush.bf16.xpose.msra.mxu0 %v208_v3 }
  0x22   :  { %102 = vmatpush.bf16.xpose.msra.mxu0 %v207_v4 }
  0x2a   :  { %103 = vmatpush.bf16.xpose.msra.mxu0 %v206_v5 }
  0x32   :  { %104 = vmatpush.bf16.xpose.msra.mxu0 %v205_v6 }
  0x3a   :  { %105 = vmatpush.bf16.xpose.msra.mxu0 %v204_v7 }
  0x41   :  { %106 = vmatmul.bf16.vlgmr.msra.gmra.mxu0 %v203_v8 }
  0xbe   :  { %v107_v10 = vpop.f32.mrf.mxu0 }
  0xbf   :  { %v112_v11 = vadd.f32 %v212_v9, %v107_v10 }
  0xc1   :  { %v201_v12 = vmul.f32 -1.442695, %v112_v11 }
  0xc3   :  { %213 = vpow2.f32 %v201_v12 }
  0xc6   :  { %v109_v13 = vpop.f32.mrf.mxu0 }
  0xc7   :  { %v113_v14 = vadd.f32 %v212_v9, %v109_v13 }
  0xc9   :  { %v214_v15 = vpop.eup %213  ;;  %v202_v16 = vmul.f32 -1.442695, %v113_v14 }
  0xca   :  { %v127_v17 = vadd.f32 1.0, %v214_v15 }
  0xcb   :  { %215 = vpow2.f32 %v202_v16 }
  0xcc   :  { %217 = vrcp.f32 %v127_v17  ;;  %v140_v23 = vand.u32 2147483648, %v127_v17  ;;  %v138_v25 = vand.u32 2147483647, %v127_v17  ;;  %vm134_vm1 = vweird.f32 %v127_v17 }
  0xce   :  { %v141_v28 = vor.u32 1.1754944e-38, %v140_v23  ;;  %vm139_vm3 = vcmp.eq.f32.partialorder %v138_v25, 8.507059e+37 }
  0xd1   :  { %v216_v18 = vpop.eup %215 }
  0xd2   :  { %v218_v19 = vpop.eup %217  ;;  %v128_v20 = vadd.f32 1.0, %v216_v18 }
  0xd3   :  { %v130_v21 = vmul.f32 %v218_v19, %v127_v17  ;;  %vm135_vm0 = vweird.f32 %v218_v19 }
  0xd4   :  { %219 = vrcp.f32 %v128_v20  ;;  %vm136_vm2 = vmor %vm134_vm1, %vm135_vm0  ;;  %v155_v33 = vand.u32 2147483648, %v128_v20  ;;  %v153_v35 = vand.u32 2147483647, %v128_v20  ;;  %vm149_vm5 = vweird.f32 %v128_v20 }
  0xd5   :  { %v131_v22 = vsub.f32 1.0, %v130_v21 }
  0xd6   :  { %v156_v37 = vor.u32 1.1754944e-38, %v155_v33  ;;  %vm154_vm7 = vcmp.eq.f32.partialorder %v153_v35, 8.507059e+37 }
  0xd7   :  { %v132_v24 = vmul.f32 %v218_v19, %v131_v22 }
  0xd9   :  { %v133_v26 = vadd.f32 %v218_v19, %v132_v24 }
  0xda   :  { %v220_v27 = vpop.eup %219 }
  0xdb   :  { %v137_v29 = vsel %vm136_vm2, %v218_v19, %v133_v26  ;;  %v145_v30 = vmul.f32 %v220_v27, %v128_v20  ;;  %vm150_vm4 = vweird.f32 %v220_v27 }
  0xdc   :  { %v142_v31 = vsel %vm139_vm3, %v141_v28, %v137_v29  ;;  %vm151_vm6 = vmor %vm149_vm5, %vm150_vm4 }
  0xdd   :  { %159 = vst [vmem:[%s280_s3] sm:$0xff] %v142_v31  ;;  %v146_v32 = vsub.f32 1.0, %v145_v30 }
  0xdf   :  { %v147_v34 = vmul.f32 %v220_v27, %v146_v32 }
  0xe1   :  { %v148_v36 = vadd.f32 %v220_v27, %v147_v34 }
  0xe3   :  { %v152_v38 = vsel %vm151_vm6, %v220_v27, %v148_v36 }
  0xe4   :  { %v157_v39 = vsel %vm154_vm7, %v156_v37, %v152_v38 }
  0xe5   :  { %160 = vst [vmem:[%s280_s3 + $0x8] sm:$0xff] %v157_v39 }

</bundles_post_ra>
